<compile_context>
chip_gen: v6e
topology: v6e:2x2x1
jax: 0.10.0
libtpu: 0.0.40
codegen_flags: <defaults>
</compile_context>

<pallas_src>
import functools

import jax
import jax.numpy as jnp
from jax.experimental import pallas as pl
from jax.experimental.pallas import tpu as pltpu

LANE = 128  # TPU lane width (last-dim tile quantum)


def _round_up(x, m):
    return (x + m - 1) // m * m


def mlp_kernel(x_ref, w1_ref, b1_ref, w2_ref, b2_ref, w3_ref, b3_ref, o_ref):
    # fc1 + tanh (bias added in the f32 matmul epilogue)
    h1 = jnp.tanh(
        jnp.dot(x_ref[...], w1_ref[...], preferred_element_type=jnp.float32)
        + b1_ref[...]
    )
    # fc2 + tanh
    h2 = jnp.tanh(
        jnp.dot(h1, w2_ref[...], preferred_element_type=jnp.float32)
        + b2_ref[...]
    )
    # fc3 (no activation). Output block is lane-dense (padded to 128 cols);
    # the wrapper slices back to the true out_dim.
    o_ref[...] = (
        jnp.dot(h2, w3_ref[...], preferred_element_type=jnp.float32)
        + b3_ref[...]
    ).astype(o_ref.dtype)


@functools.partial(jax.jit, static_argnames=("block_m",))
def mlp_forward(x, w1, b1, w2, b2, w3, b3, block_m=256):
    B, in_dim = x.shape
    hidden = w1.shape[1]
    out_dim = w3.shape[1]

    Hp = _round_up(hidden, LANE)   # padded hidden width
    Op = _round_up(out_dim, LANE)  # padded (lane-dense) output width

    f32 = jnp.float32
    # Zero-pad hidden / output dims. Exact numerics: padded bias lanes are 0,
    # padded weight rows/cols are 0, tanh(0) = 0, so padding contributes nothing.
    w1p = jnp.zeros((in_dim, Hp), f32).at[:, :hidden].set(w1.astype(f32))
    b1p = jnp.zeros((1, Hp), f32).at[:, :hidden].set(b1.reshape(1, -1).astype(f32))
    w2p = jnp.zeros((Hp, Hp), f32).at[:hidden, :hidden].set(w2.astype(f32))
    b2p = jnp.zeros((1, Hp), f32).at[:, :hidden].set(b2.reshape(1, -1).astype(f32))
    w3p = jnp.zeros((Hp, Op), f32).at[:hidden, :out_dim].set(w3.astype(f32))
    b3p = jnp.zeros((1, Op), f32).at[:, :out_dim].set(b3.reshape(1, -1).astype(f32))

    # Batch tile: a multiple of 8 sublanes, capped at block_m; pad B up to it.
    tm = min(block_m, _round_up(B, 8))
    Bp = _round_up(B, tm)
    xp = x.astype(f32)
    if Bp != B:
        xp = jnp.zeros((Bp, in_dim), f32).at[:B, :].set(xp)

    grid = (Bp // tm,)

    cost = pl.CostEstimate(
        flops=2 * Bp * (in_dim * Hp + Hp * Hp + Hp * Op),
        transcendentals=2 * Bp * Hp,
        bytes_accessed=4 * (
            xp.size + Bp * Op
            + w1p.size + b1p.size + w2p.size + b2p.size + w3p.size + b3p.size
        ),
    )

    resident = lambda i: (0, 0)  # weights/biases: same block every step -> VMEM-resident

    out_padded = pl.pallas_call(
        mlp_kernel,
        out_shape=jax.ShapeDtypeStruct((Bp, Op), f32),
        grid=grid,
        in_specs=[
            pl.BlockSpec((tm, in_dim), lambda i: (i, 0)),  # x tile (pipelined)
            pl.BlockSpec((in_dim, Hp), resident),          # w1
            pl.BlockSpec((1, Hp), resident),               # b1
            pl.BlockSpec((Hp, Hp), resident),              # w2
            pl.BlockSpec((1, Hp), resident),               # b2
            pl.BlockSpec((Hp, Op), resident),              # w3
            pl.BlockSpec((1, Op), resident),               # b3
        ],
        out_specs=pl.BlockSpec((tm, Op), lambda i: (i, 0)),
        compiler_params=pltpu.CompilerParams(
            dimension_semantics=("parallel",),
        ),
        cost_estimate=cost,
    )(xp, w1p, b1p, w2p, b2p, w3p, b3p)

    # Slice padded batch rows / output lanes back to the true shape.
    return out_padded[:B, :out_dim]


def init_params(key, input_dim=8, hidden_num=100):
    # Deterministic init mimicking PyTorch nn.Linear default:
    # U(-1/sqrt(fan_in), 1/sqrt(fan_in)) for both weight and bias.
    # Weights stored (in_features, out_features) so the kernel computes x @ W + b.
    def linear(key, fan_in, fan_out):
        kw, kb = jax.random.split(key)
        bound = 1.0 / jnp.sqrt(jnp.asarray(fan_in, jnp.float32))
        w = jax.random.uniform(kw, (fan_in, fan_out), jnp.float32, -bound, bound)
        b = jax.random.uniform(kb, (1, fan_out), jnp.float32, -bound, bound)
        return w, b

    k1, k2, k3 = jax.random.split(key, 3)
    w1, b1 = linear(k1, input_dim, hidden_num)
    w2, b2 = linear(k2, hidden_num, hidden_num)
    w3, b3 = linear(k3, hidden_num, 1)
    return w1, b1, w2, b2, w3, b3


if __name__ == "__main__":
    key = jax.random.PRNGKey(0)
    kx, kp = jax.random.split(key)

    input_dim, hidden_num, batch = 8, 100, 8
    x = jax.random.normal(kx, (batch, input_dim), jnp.float32)
    w1, b1, w2, b2, w3, b3 = init_params(kp, input_dim, hidden_num)

    out = mlp_forward(x, w1, b1, w2, b2, w3, b3)
    jax.block_until_ready(out)

    # Reference check in plain JAX (unpadded shapes).
    ref = jnp.tanh(x @ w1 + b1)
    ref = jnp.tanh(ref @ w2 + b2)
    ref = ref @ w3 + b3
    assert out.shape == (batch, 1)
    assert jnp.allclose(out, ref, atol=1e-5, rtol=1e-4)

    print("KERNEL_OK")
</pallas_src>

<mosaic_0001>
module attributes {stable_mosaic.version = 11 : i64} {
  func.func @mlp_kernel(%arg0: i32, %arg1: memref<8x8xf32, #tpu.memory_space<vmem>>, %arg2: memref<8x128xf32, #tpu.memory_space<vmem>>, %arg3: memref<1x128xf32, #tpu.memory_space<vmem>>, %arg4: memref<128x128xf32, #tpu.memory_space<vmem>>, %arg5: memref<1x128xf32, #tpu.memory_space<vmem>>, %arg6: memref<128x128xf32, #tpu.memory_space<vmem>>, %arg7: memref<1x128xf32, #tpu.memory_space<vmem>>, %arg8: memref<8x128xf32, #tpu.memory_space<vmem>>) attributes {dimension_semantics = [#tpu.dimension_semantics<parallel>], iteration_bounds = array<i64: 1>, scalar_prefetch = 0 : i64, scratch_operands = 0 : i64, tpu.core_type = #tpu.core_type<tc>, window_params = [{transform_indices = @transform_0, window_bounds = array<i64: 8, 8>}, {pipeline_mode = #tpu.pipeline_mode<synchronous>, transform_indices = @transform_1, window_bounds = array<i64: 8, 128>}, {pipeline_mode = #tpu.pipeline_mode<synchronous>, transform_indices = @transform_2, window_bounds = array<i64: 1, 128>}, {pipeline_mode = #tpu.pipeline_mode<synchronous>, transform_indices = @transform_3, window_bounds = array<i64: 128, 128>}, {pipeline_mode = #tpu.pipeline_mode<synchronous>, transform_indices = @transform_4, window_bounds = array<i64: 1, 128>}, {pipeline_mode = #tpu.pipeline_mode<synchronous>, transform_indices = @transform_5, window_bounds = array<i64: 128, 128>}, {pipeline_mode = #tpu.pipeline_mode<synchronous>, transform_indices = @transform_6, window_bounds = array<i64: 1, 128>}, {transform_indices = @transform_7, window_bounds = array<i64: 8, 128>}]} {
    %c0 = arith.constant 0 : index
    %c0_0 = arith.constant 0 : index
    %0 = vector.load %arg1[%c0, %c0_0] : memref<8x8xf32, #tpu.memory_space<vmem>>, vector<8x8xf32>
    %c0_1 = arith.constant 0 : index
    %c0_2 = arith.constant 0 : index
    %1 = vector.load %arg2[%c0_1, %c0_2] : memref<8x128xf32, #tpu.memory_space<vmem>>, vector<8x128xf32>
    %cst = arith.constant dense<0.000000e+00> : vector<8x128xf32>
    %2 = tpu.matmul %0, %1, %cst {dimension_numbers = #tpu.dot_dimension_numbers<[1], [0], [0], [1], [0, 0, 1, 1], [], []>} : vector<8x8xf32>, vector<8x128xf32>, vector<8x128xf32> -> vector<8x128xf32>
    %c0_3 = arith.constant 0 : index
    %c0_4 = arith.constant 0 : index
    %3 = vector.load %arg3[%c0_3, %c0_4] : memref<1x128xf32, #tpu.memory_space<vmem>>, vector<1x128xf32>
    %4 = vector.broadcast %3 : vector<1x128xf32> to vector<8x128xf32>
    %5 = arith.addf %2, %4 : vector<8x128xf32>
    %6 = math.tanh %5 : vector<8x128xf32>
    %c0_5 = arith.constant 0 : index
    %c0_6 = arith.constant 0 : index
    %7 = vector.load %arg4[%c0_5, %c0_6] : memref<128x128xf32, #tpu.memory_space<vmem>>, vector<128x128xf32>
    %cst_7 = arith.constant dense<0.000000e+00> : vector<8x128xf32>
    %8 = tpu.matmul %6, %7, %cst_7 {dimension_numbers = #tpu.dot_dimension_numbers<[1], [0], [0], [1], [0, 0, 1, 1], [], []>} : vector<8x128xf32>, vector<128x128xf32>, vector<8x128xf32> -> vector<8x128xf32>
    %c0_8 = arith.constant 0 : index
    %c0_9 = arith.constant 0 : index
    %9 = vector.load %arg5[%c0_8, %c0_9] : memref<1x128xf32, #tpu.memory_space<vmem>>, vector<1x128xf32>
    %10 = vector.broadcast %9 : vector<1x128xf32> to vector<8x128xf32>
    %11 = arith.addf %8, %10 : vector<8x128xf32>
    %12 = math.tanh %11 : vector<8x128xf32>
    %c0_10 = arith.constant 0 : index
    %c0_11 = arith.constant 0 : index
    %13 = vector.load %arg6[%c0_10, %c0_11] : memref<128x128xf32, #tpu.memory_space<vmem>>, vector<128x128xf32>
    %cst_12 = arith.constant dense<0.000000e+00> : vector<8x128xf32>
    %14 = tpu.matmul %12, %13, %cst_12 {dimension_numbers = #tpu.dot_dimension_numbers<[1], [0], [0], [1], [0, 0, 1, 1], [], []>} : vector<8x128xf32>, vector<128x128xf32>, vector<8x128xf32> -> vector<8x128xf32>
    %c0_13 = arith.constant 0 : index
    %c0_14 = arith.constant 0 : index
    %15 = vector.load %arg7[%c0_13, %c0_14] : memref<1x128xf32, #tpu.memory_space<vmem>>, vector<1x128xf32>
    %16 = vector.broadcast %15 : vector<1x128xf32> to vector<8x128xf32>
    %17 = arith.addf %14, %16 : vector<8x128xf32>
    %c0_15 = arith.constant 0 : index
    %c0_16 = arith.constant 0 : index
    %18 = vector.load %arg8[%c0_15, %c0_16] : memref<8x128xf32, #tpu.memory_space<vmem>>, vector<8x128xf32>
    tpu.vector_store %arg8[%c0_15, %c0_16], %17 {strides = array<i32>} : memref<8x128xf32, #tpu.memory_space<vmem>>, vector<8x128xf32>,
    return
  }
  func.func @transform_0(%arg0: i32) -> (i32, i32) {
    %c0_i32 = arith.constant 0 : i32
    %c0_i32_0 = arith.constant 0 : i32
    return %arg0, %c0_i32 : i32, i32
  }
  func.func @transform_1(%arg0: i32) -> (i32, i32) {
    %c0_i32 = arith.constant 0 : i32
    %c0_i32_0 = arith.constant 0 : i32
    %c0_i32_1 = arith.constant 0 : i32
    return %c0_i32, %c0_i32_0 : i32, i32
  }
  func.func @transform_2(%arg0: i32) -> (i32, i32) {
    %c0_i32 = arith.constant 0 : i32
    %c0_i32_0 = arith.constant 0 : i32
    %c0_i32_1 = arith.constant 0 : i32
    return %c0_i32, %c0_i32_0 : i32, i32
  }
  func.func @transform_3(%arg0: i32) -> (i32, i32) {
    %c0_i32 = arith.constant 0 : i32
    %c0_i32_0 = arith.constant 0 : i32
    %c0_i32_1 = arith.constant 0 : i32
    return %c0_i32, %c0_i32_0 : i32, i32
  }
  func.func @transform_4(%arg0: i32) -> (i32, i32) {
    %c0_i32 = arith.constant 0 : i32
    %c0_i32_0 = arith.constant 0 : i32
    %c0_i32_1 = arith.constant 0 : i32
    return %c0_i32, %c0_i32_0 : i32, i32
  }
  func.func @transform_5(%arg0: i32) -> (i32, i32) {
    %c0_i32 = arith.constant 0 : i32
    %c0_i32_0 = arith.constant 0 : i32
    %c0_i32_1 = arith.constant 0 : i32
    return %c0_i32, %c0_i32_0 : i32, i32
  }
  func.func @transform_6(%arg0: i32) -> (i32, i32) {
    %c0_i32 = arith.constant 0 : i32
    %c0_i32_0 = arith.constant 0 : i32
    %c0_i32_1 = arith.constant 0 : i32
    return %c0_i32, %c0_i32_0 : i32, i32
  }
  func.func @transform_7(%arg0: i32) -> (i32, i32) {
    %c0_i32 = arith.constant 0 : i32
    %c0_i32_0 = arith.constant 0 : i32
    return %arg0, %c0_i32 : i32, i32
  }
}

</mosaic_0001>

<bundles_post_ra>
// kernel: mlp_forward.1
= control target key start
LH: loop header
LB: loop body
LE: loop exit
PB: predicated region body
PF: predicated region fallthrough
CT: control target
= control target key end

     0   :  { %vm35_vm0 = vcmask 64512   ;;  %v423_v0 = vmov 0.0   ;;  %vm424_vm1 = vmmov 0   ;;  %s618_s1 = inlined_call_operand.vmem [shape: f32[8,128], index: 1, kind: input, shape index: {}]   ;;  %s619_s0 = inlined_call_operand.vmem [shape: f32[8,8], index: 0, kind: input, shape index: {}]   ;;  %s620_s3 = inlined_call_operand.vmem [shape: f32[128,128], index: 3, kind: input, shape index: {}]   ;;  %s621_s5 = inlined_call_operand.vmem [shape: f32[128,128], index: 5, kind: input, shape index: {}]   ;;  %s622_s2 = inlined_call_operand.vmem [shape: f32[1,128], index: 2, kind: input, shape index: {}]   ;;  %s623_s4 = inlined_call_operand.vmem [shape: f32[1,128], index: 4, kind: input, shape index: {}]   ;;  %s624_s6 = inlined_call_operand.vmem [shape: f32[1,128], index: 6, kind: input, shape index: {}]   ;;  %s625_s7 = inlined_call_operand.vmem [shape: f32[8,128], index: 7, kind: output, shape index: {}]  }
   0x1   :  { %342 = vmatprep.subr.mxu0 %v423_v0  ;;  %v27_v1 = vld [vmem:[%s618_s1] sm:$0xff]  ;;  %344 = vmatprep.mubr.msk.f32.mxu0 %vm424_vm1, %v423_v0  ;;  %v125_v3 = vld [vmem:[%s620_s3 + $0x78] sm:$0xff]  ;;  %v124_v4 = vld [vmem:[%s620_s3 + $0x70] sm:$0xff] }
   0x2   :  { %v26_v2 = vld [vmem:[%s619_s0] sm:$0xff]  ;;  %343 = vmatpush3.msra.mxu0 %v27_v1  ;;  %347 = vmatprep.subr.mxu1 %v423_v0  ;;  %v123_v5 = vld [vmem:[%s620_s3 + $0x68] sm:$0xff]  ;;  %v121_v7 = vld [vmem:[%s620_s3 + $0x58] sm:$0xff] }
   0x3   :  { %345 = vmatmul.mubr.msk.f32.vlgmr.msra.gmra.mxu0 %vm35_vm0, %v26_v2  ;;  %348 = vmatpush3.msra.mxu1 %v125_v3  ;;  %v122_v6 = vld [vmem:[%s620_s3 + $0x60] sm:$0xff]  ;;  %v120_v8 = vld [vmem:[%s620_s3 + $0x50] sm:$0xff]  ;;  %v119_v9 = vld [vmem:[%s620_s3 + $0x48] sm:$0xff] }
   0x4   :  { %349 = vmatprep.subr.mxu1 %v423_v0  ;;  %379 = vmatprep.mubr.msk.f32.mxu1 %vm424_vm1, %v423_v0  ;;  %v118_v10 = vld [vmem:[%s620_s3 + $0x40] sm:$0xff]  ;;  %v117_v11 = vld [vmem:[%s620_s3 + $0x38] sm:$0xff]  ;;  %v116_v12 = vld [vmem:[%s620_s3 + $0x30] sm:$0xff] }
   0x5   :  { %350 = vmatpush3.msra.mxu1 %v124_v4  ;;  %382 = vmatprep.subr.mxu0 %v423_v0  ;;  %v115_v13 = vld [vmem:[%s620_s3 + $0x28] sm:$0xff]  ;;  %v114_v14 = vld [vmem:[%s620_s3 + $0x20] sm:$0xff]  ;;  %v113_v15 = vld [vmem:[%s620_s3 + $0x18] sm:$0xff] }
   0x6   :  { %351 = vmatprep.subr.mxu1 %v423_v0  ;;  %414 = vmatprep.mubr.msk.f32.mxu0 %vm424_vm1, %v423_v0  ;;  %v112_v16 = vld [vmem:[%s620_s3 + $0x10] sm:$0xff]  ;;  %v111_v17 = vld [vmem:[%s620_s3 + $0x8] sm:$0xff]  ;;  %v110_v18 = vld [vmem:[%s620_s3] sm:$0xff] }
   0x7   :  { %352 = vmatpush3.msra.mxu1 %v123_v5  ;;  %v219_v19 = vld [vmem:[%s621_s5 + $0x78] sm:$0xff]  ;;  %v218_v20 = vld [vmem:[%s621_s5 + $0x70] sm:$0xff]  ;;  %v217_v21 = vld [vmem:[%s621_s5 + $0x68] sm:$0xff] }
   0x8   :  { %353 = vmatprep.subr.mxu1 %v423_v0  ;;  %383 = vmatpush3.msra.mxu0 %v219_v19  ;;  %v216_v22 = vld [vmem:[%s621_s5 + $0x60] sm:$0xff]  ;;  %v215_v23 = vld [vmem:[%s621_s5 + $0x58] sm:$0xff]  ;;  %v214_v24 = vld [vmem:[%s621_s5 + $0x50] sm:$0xff] }
   0x9   :  { %354 = vmatpush3.msra.mxu1 %v122_v6  ;;  %384 = vmatprep.subr.mxu0 %v423_v0  ;;  %v213_v25 = vld [vmem:[%s621_s5 + $0x48] sm:$0xff]  ;;  %v302_v26 = vld [vmem:[%s622_s2] ss:$0 sm:$0xff]  ;;  %v211_v32 = vld [vmem:[%s621_s5 + $0x38] sm:$0xff] }
   0xa   :  { %355 = vmatprep.subr.mxu1 %v423_v0  ;;  %385 = vmatpush3.msra.mxu0 %v218_v20  ;;  %v212_v31 = vld [vmem:[%s621_s5 + $0x40] sm:$0xff]  ;;  %v210_v33 = vld [vmem:[%s621_s5 + $0x30] sm:$0xff]  ;;  %v209_v34 = vld [vmem:[%s621_s5 + $0x28] sm:$0xff] }
   0xb   :  { %356 = vmatpush3.msra.mxu1 %v121_v7  ;;  %386 = vmatprep.subr.mxu0 %v423_v0  ;;  %v208_v35 = vld [vmem:[%s621_s5 + $0x20] sm:$0xff]  ;;  %v207_v36 = vld [vmem:[%s621_s5 + $0x18] sm:$0xff]  ;;  %v206_v37 = vld [vmem:[%s621_s5 + $0x10] sm:$0xff] }
   0xc   :  { %357 = vmatprep.subr.mxu1 %v423_v0  ;;  %387 = vmatpush3.msra.mxu0 %v217_v21  ;;  %v205_v38 = vld [vmem:[%s621_s5 + $0x8] sm:$0xff]  ;;  %v204_v39 = vld [vmem:[%s621_s5] sm:$0xff] }
   0xd   :  { %358 = vmatpush3.msra.mxu1 %v120_v8  ;;  %388 = vmatprep.subr.mxu0 %v423_v0  ;;  %v304_v40 = vld [vmem:[%s623_s4] ss:$0 sm:$0xff] }
   0xe   :  { %359 = vmatprep.subr.mxu1 %v423_v0  ;;  %389 = vmatpush3.msra.mxu0 %v216_v22  ;;  %v305_v45 = vld [vmem:[%s624_s6] ss:$0 sm:$0xff] }
   0xf   :  { %360 = vmatpush3.msra.mxu1 %v119_v9  ;;  %390 = vmatprep.subr.mxu0 %v423_v0 }
  0x10   :  { %361 = vmatprep.subr.mxu1 %v423_v0  ;;  %391 = vmatpush3.msra.mxu0 %v215_v23 }
  0x11   :  { %362 = vmatpush3.msra.mxu1 %v118_v10  ;;  %392 = vmatprep.subr.mxu0 %v423_v0 }
  0x12   :  { %363 = vmatprep.subr.mxu1 %v423_v0  ;;  %393 = vmatpush3.msra.mxu0 %v214_v24 }
  0x13   :  { %364 = vmatpush3.msra.mxu1 %v117_v11  ;;  %394 = vmatprep.subr.mxu0 %v423_v0 }
  0x14   :  { %365 = vmatprep.subr.mxu1 %v423_v0  ;;  %395 = vmatpush3.msra.mxu0 %v213_v25 }
  0x15   :  { %366 = vmatpush3.msra.mxu1 %v116_v12  ;;  %396 = vmatprep.subr.mxu0 %v423_v0 }
  0x16   :  { %367 = vmatprep.subr.mxu1 %v423_v0  ;;  %397 = vmatpush3.msra.mxu0 %v212_v31 }
  0x17   :  { %368 = vmatpush3.msra.mxu1 %v115_v13  ;;  %398 = vmatprep.subr.mxu0 %v423_v0 }
  0x18   :  { %369 = vmatprep.subr.mxu1 %v423_v0  ;;  %399 = vmatpush3.msra.mxu0 %v211_v32 }
  0x19   :  { %370 = vmatpush3.msra.mxu1 %v114_v14  ;;  %400 = vmatprep.subr.mxu0 %v423_v0 }
  0x1a   :  { %371 = vmatprep.subr.mxu1 %v423_v0  ;;  %401 = vmatpush3.msra.mxu0 %v210_v33 }
  0x1b   :  { %372 = vmatpush3.msra.mxu1 %v113_v15  ;;  %402 = vmatprep.subr.mxu0 %v423_v0 }
  0x1c   :  { %373 = vmatprep.subr.mxu1 %v423_v0  ;;  %403 = vmatpush3.msra.mxu0 %v209_v34 }
  0x1d   :  { %374 = vmatpush3.msra.mxu1 %v112_v16  ;;  %404 = vmatprep.subr.mxu0 %v423_v0 }
  0x1e   :  { %375 = vmatprep.subr.mxu1 %v423_v0  ;;  %405 = vmatpush3.msra.mxu0 %v208_v35 }
  0x1f   :  { %376 = vmatpush3.msra.mxu1 %v111_v17  ;;  %406 = vmatprep.subr.mxu0 %v423_v0 }
  0x20   :  { %377 = vmatprep.subr.mxu1 %v423_v0  ;;  %407 = vmatpush3.msra.mxu0 %v207_v36 }
  0x21   :  { %378 = vmatpush3.msra.mxu1 %v110_v18  ;;  %408 = vmatprep.subr.mxu0 %v423_v0 }
  0x22   :  { %409 = vmatpush3.msra.mxu0 %v206_v37 }
  0x23   :  { %410 = vmatprep.subr.mxu0 %v423_v0 }
  0x24   :  { %411 = vmatpush3.msra.mxu0 %v205_v38 }
  0x25   :  { %412 = vmatprep.subr.mxu0 %v423_v0 }
  0x26   :  { %413 = vmatpush3.msra.mxu0 %v204_v39 }
  0xc3   :  { %v105_v27 = vpop.f32.mrf.mxu0 }
  0xc4   :  { %v106_v28 = vadd.f32 %v302_v26, %v105_v27 }
  0xc5   :  { %v346_v29 = vpop.f32.mrf.mxu0 }
  0xc6   :  { %419 = vtanh.f32 %v106_v28 }
  0xd3   :  { %v420_v30 = vpop.eup %419 }
  0xd4   :  { %380 = vmatmul.mubr.f32.vlgmr.msra.gmra.mxu1 %v420_v30 }
 0x194   :  { %v199_v41 = vpop.f32.mrf.mxu1 }
 0x195   :  { %v200_v42 = vadd.f32 %v304_v40, %v199_v41 }
 0x196   :  { %v381_v43 = vpop.f32.mrf.mxu1 }
 0x197   :  { %421 = vtanh.f32 %v200_v42 }
 0x1a4   :  { %v422_v44 = vpop.eup %421 }
 0x1a5   :  { %415 = vmatmul.mubr.f32.vlgmr.msra.gmra.mxu0 %v422_v44 }
 0x265   :  { %v293_v46 = vpop.f32.mrf.mxu0 }
 0x266   :  { %v294_v47 = vadd.f32 %v305_v45, %v293_v46 }
 0x267   :  { %v416_v48 = vpop.f32.mrf.mxu0 }
 0x268   :  { %297 = vst [vmem:[%s625_s7] sm:$0xff] %v294_v47 }

</bundles_post_ra>
